<compile_context>
chip_gen: v6e
topology: v6e:2x2x1
jax: 0.10.0
libtpu: 0.0.40
codegen_flags: <defaults>
</compile_context>

<pallas_src>
import functools

import jax
import jax.numpy as jnp
from jax import lax
from jax.experimental import pallas as pl
from jax.experimental.pallas import tpu as pltpu


def _round_up(v, m):
    return ((v + m - 1) // m) * m


def _choose_tile_rows(n, c, itemsize, vmem_block_budget_bytes=24 * 1024 * 1024):
    """Pick the largest multiple-of-8 row tile that fits a conservative VMEM budget.

    Budget per row ~= double-buffered input block (2 * C * itemsize) plus a few
    f32 (TM, C) temporaries inside the kernel.  The 24 MiB budget leaves
    headroom even on v7x's smaller (64 MiB physical) VMEM.
    """
    bytes_per_row = c * (2 * itemsize + 16) + 8
    tm = vmem_block_budget_bytes // max(bytes_per_row, 1)
    tm = max(8, min(1024, (tm // 8) * 8))
    tm = min(tm, _round_up(n, 8))
    return int(tm)


def _label_smooth_kernel(tgt_ref, x_ref, out_ref, *, off_val, on_val, n_rows,
                         tile_rows):
    i = pl.program_id(0)

    x = x_ref[...].astype(jnp.float32)                   # (TM, C)
    tm, c = x.shape

    # --- numerically stable logsumexp along the class (lane) axis ---
    m = jnp.max(x, axis=-1, keepdims=True)               # (TM, 1)
    shifted = x - m                                      # (TM, C)
    lse = jnp.log(jnp.sum(jnp.exp(shifted), axis=-1, keepdims=True))  # (TM, 1)

    # --- smoothed loss without materializing weight or log_prob ---
    # sum_c w_c = 1, so  row_loss = lse - sum_c(w_c * shifted_c)
    #                            = lse - [off*sum(shifted) + (on-off)*shifted[tgt]]
    col = lax.broadcasted_iota(jnp.int32, (1, c), 1)     # (1, C), broadcast below
    tgt = tgt_ref[...]                                   # (TM, 1) int32
    is_tgt = col == tgt                                  # (TM, C) via broadcast

    sum_shifted = jnp.sum(shifted, axis=-1, keepdims=True)                    # (TM,1)
    tgt_shifted = jnp.sum(jnp.where(is_tgt, shifted, 0.0), axis=-1,
                          keepdims=True)                                      # (TM,1)

    row_loss = lse - (off_val * sum_shifted + (on_val - off_val) * tgt_shifted)

    # Zero-out padded rows (N not a multiple of the row tile).
    row_idx = i * tile_rows + lax.broadcasted_iota(jnp.int32, (tm, 1), 0)
    row_loss = jnp.where(row_idx < n_rows, row_loss, 0.0)

    out_ref[...] = row_loss                              # per-row partial losses


def label_smooth_loss(x, target, smoothing=0.1, tile_rows=None,
                      vmem_limit_bytes=48 * 1024 * 1024):
    """x: (N, C) float logits; target: (N,) int labels. Returns scalar loss."""
    n, c = x.shape
    if tile_rows is None:
        tile_rows = _choose_tile_rows(n, c, jnp.dtype(x.dtype).itemsize)

    num_tiles = pl.cdiv(n, tile_rows)
    n_pad = num_tiles * tile_rows

    tgt = target.astype(jnp.int32).reshape(n, 1)
    if n_pad != n:
        x = jnp.pad(x, ((0, n_pad - n), (0, 0)))
        tgt = jnp.pad(tgt, ((0, n_pad - n), (0, 0)))

    # Derive the off-target weight from the true class count (not block shape).
    off_val = float(smoothing) / (c - 1.0)
    on_val = 1.0 - float(smoothing)

    kernel = functools.partial(
        _label_smooth_kernel,
        off_val=off_val, on_val=on_val, n_rows=n, tile_rows=tile_rows,
    )

    # TODO(synk): for vocab-scale C the full (TM, C) row block exceeds VMEM;
    # add a class-axis grid dimension with a two-pass / online logsumexp.
    per_row = pl.pallas_call(
        kernel,
        out_shape=jax.ShapeDtypeStruct((n_pad, 1), jnp.float32),
        grid=(num_tiles,),
        in_specs=[
            pl.BlockSpec((tile_rows, 1), lambda i: (i, 0)),   # targets
            pl.BlockSpec((tile_rows, c), lambda i: (i, 0)),   # logits
        ],
        out_specs=pl.BlockSpec((tile_rows, 1), lambda i: (i, 0)),
        compiler_params=pltpu.CompilerParams(
            dimension_semantics=("parallel",),   # independent tiles → megacore OK
            vmem_limit_bytes=vmem_limit_bytes,
        ),
    )(tgt, x)

    # Final tiny reduction (padded rows contribute exactly 0).
    return jnp.sum(per_row) / jnp.float32(n)


def label_smooth_loss_ref(x, target, smoothing=0.1):
    """Pure-JAX reference mirroring the PyTorch module."""
    n, c = x.shape
    log_prob = jax.nn.log_softmax(x.astype(jnp.float32), axis=-1)
    weight = jnp.full((n, c), smoothing / (c - 1.0), dtype=jnp.float32)
    onehot = jax.nn.one_hot(target, c, dtype=jnp.float32)
    weight = weight * (1.0 - onehot) + onehot * (1.0 - smoothing)
    return jnp.mean(jnp.sum(-weight * log_prob, axis=-1))


if __name__ == "__main__":
    key = jax.random.PRNGKey(0)
    k1, k2, k3, k4 = jax.random.split(key, 4)

    # Case 1: small, tile-aligned shape.
    N, C = 16, 32
    x = jax.random.normal(k1, (N, C), dtype=jnp.float32)
    target = jax.random.randint(k2, (N,), 0, C, dtype=jnp.int32)

    loss = jax.block_until_ready(label_smooth_loss(x, target, smoothing=0.1))
    ref = jax.block_until_ready(label_smooth_loss_ref(x, target, smoothing=0.1))
    assert jnp.allclose(loss, ref, rtol=1e-5, atol=1e-5), (loss, ref)

    # Case 2: ragged row count (exercises padding + row masking).
    N2, C2 = 13, 32
    x2 = jax.random.normal(k3, (N2, C2), dtype=jnp.float32)
    target2 = jax.random.randint(k4, (N2,), 0, C2, dtype=jnp.int32)

    loss2 = jax.block_until_ready(label_smooth_loss(x2, target2, smoothing=0.1))
    ref2 = jax.block_until_ready(label_smooth_loss_ref(x2, target2, smoothing=0.1))
    assert jnp.allclose(loss2, ref2, rtol=1e-5, atol=1e-5), (loss2, ref2)

    print("KERNEL_OK")
</pallas_src>

<mosaic_0001>
module attributes {stable_mosaic.version = 11 : i64} {
  func.func @_label_smooth_kernel(%arg0: i32, %arg1: memref<16x1xi32, #tpu.memory_space<vmem>>, %arg2: memref<16x32xf32, #tpu.memory_space<vmem>>, %arg3: memref<16x1xf32, #tpu.memory_space<vmem>>) attributes {dimension_semantics = [#tpu.dimension_semantics<parallel>], iteration_bounds = array<i64: 1>, scalar_prefetch = 0 : i64, scratch_operands = 0 : i64, tpu.core_type = #tpu.core_type<tc>, window_params = [{transform_indices = @transform_0, window_bounds = array<i64: 16, 1>}, {transform_indices = @transform_1, window_bounds = array<i64: 16, 32>}, {transform_indices = @transform_2, window_bounds = array<i64: 16, 1>}]} {
    %c0 = arith.constant 0 : index
    %c0_0 = arith.constant 0 : index
    %0 = vector.load %arg2[%c0, %c0_0] : memref<16x32xf32, #tpu.memory_space<vmem>>, vector<16x32xf32>
    %cst = arith.constant dense<0xFF800000> : vector<16xf32>
    %1 = vector.multi_reduction <maximumf>, %0, %cst [1] : vector<16x32xf32> to vector<16xf32>
    %2 = vector.shape_cast %1 : vector<16xf32> to vector<16x1xf32>
    %3 = vector.broadcast %2 : vector<16x1xf32> to vector<16x32xf32>
    %4 = arith.subf %0, %3 : vector<16x32xf32>
    %5 = math.exp %4 : vector<16x32xf32>
    %cst_1 = arith.constant dense<0.000000e+00> : vector<16xf32>
    %6 = vector.multi_reduction <add>, %5, %cst_1 [1] : vector<16x32xf32> to vector<16xf32>
    %7 = vector.shape_cast %6 : vector<16xf32> to vector<16x1xf32>
    %8 = math.log %7 : vector<16x1xf32>
    %9 = tpu.iota {dimensions = array<i32: 1>} : vector<1x32xi32>
    %c0_2 = arith.constant 0 : index
    %c0_3 = arith.constant 0 : index
    %10 = vector.load %arg1[%c0_2, %c0_3] : memref<16x1xi32, #tpu.memory_space<vmem>>, vector<16x1xi32>
    %11 = vector.broadcast %9 : vector<1x32xi32> to vector<16x32xi32>
    %12 = vector.broadcast %10 : vector<16x1xi32> to vector<16x32xi32>
    %13 = arith.cmpi eq, %11, %12 : vector<16x32xi32>
    %cst_4 = arith.constant dense<0.000000e+00> : vector<16xf32>
    %14 = vector.multi_reduction <add>, %4, %cst_4 [1] : vector<16x32xf32> to vector<16xf32>
    %15 = vector.shape_cast %14 : vector<16xf32> to vector<16x1xf32>
    %cst_5 = arith.constant 0.000000e+00 : f32
    %16 = vector.broadcast %cst_5 : f32 to vector<16x32xf32>
    %17 = arith.select %13, %4, %16 : vector<16x32xi1>, vector<16x32xf32>
    %cst_6 = arith.constant dense<0.000000e+00> : vector<16xf32>
    %18 = vector.multi_reduction <add>, %17, %cst_6 [1] : vector<16x32xf32> to vector<16xf32>
    %19 = vector.shape_cast %18 : vector<16xf32> to vector<16x1xf32>
    %cst_7 = arith.constant 0.0032258064 : f32
    %20 = vector.broadcast %cst_7 : f32 to vector<16x1xf32>
    %21 = arith.mulf %20, %15 : vector<16x1xf32>
    %cst_8 = arith.constant 0.896774172 : f32
    %22 = vector.broadcast %cst_8 : f32 to vector<16x1xf32>
    %23 = arith.mulf %22, %19 : vector<16x1xf32>
    %24 = arith.addf %21, %23 : vector<16x1xf32>
    %25 = arith.subf %8, %24 : vector<16x1xf32>
    %c16_i32 = arith.constant 16 : i32
    %26 = arith.muli %arg0, %c16_i32 : i32
    %27 = tpu.iota {dimensions = array<i32: 0>} : vector<16x1xi32>
    %28 = vector.broadcast %26 : i32 to vector<16x1xi32>
    %29 = arith.addi %28, %27 : vector<16x1xi32>
    %c16_i32_9 = arith.constant 16 : i32
    %30 = vector.broadcast %c16_i32_9 : i32 to vector<16x1xi32>
    %31 = arith.cmpi slt, %29, %30 : vector<16x1xi32>
    %cst_10 = arith.constant 0.000000e+00 : f32
    %32 = vector.broadcast %cst_10 : f32 to vector<16x1xf32>
    %33 = arith.select %31, %25, %32 : vector<16x1xi1>, vector<16x1xf32>
    %c0_11 = arith.constant 0 : index
    %c0_12 = arith.constant 0 : index
    %34 = vector.load %arg3[%c0_11, %c0_12] : memref<16x1xf32, #tpu.memory_space<vmem>>, vector<16x1xf32>
    tpu.vector_store %arg3[%c0_11, %c0_12], %33 {strides = array<i32>} : memref<16x1xf32, #tpu.memory_space<vmem>>, vector<16x1xf32>,
    return
  }
  func.func @transform_0(%arg0: i32) -> (i32, i32) {
    %c0_i32 = arith.constant 0 : i32
    %c0_i32_0 = arith.constant 0 : i32
    return %arg0, %c0_i32 : i32, i32
  }
  func.func @transform_1(%arg0: i32) -> (i32, i32) {
    %c0_i32 = arith.constant 0 : i32
    %c0_i32_0 = arith.constant 0 : i32
    return %arg0, %c0_i32 : i32, i32
  }
  func.func @transform_2(%arg0: i32) -> (i32, i32) {
    %c0_i32 = arith.constant 0 : i32
    %c0_i32_0 = arith.constant 0 : i32
    return %arg0, %c0_i32 : i32, i32
  }
}

</mosaic_0001>

<bundles_post_ra>
// kernel: tpu_custom_call.1
= control target key start
LH: loop header
LB: loop body
LE: loop exit
PB: predicated region body
PF: predicated region fallthrough
CT: control target
= control target key end

     0   :  { %vm13_vm0 = vcmask 261120   ;;  %v99_v2 = vmov 0   ;;  %v36_v13 = vlaneseq  ;;  %vm81_vm3 = vcmask 7168   ;;  %s141_s1 = inlined_call_operand.vmem [shape: f32[16,32], index: 1, kind: input, shape index: {}]   ;;  %s142_s0 = inlined_call_operand.vmem [shape: s32[16,1], index: 0, kind: input, shape index: {}]   ;;  %s143_s2 = inlined_call_operand.vmem [shape: f32[16,1], index: 2, kind: output, shape index: {}]  }
   0x1   :  { %v11_v0 = vld [vmem:[%s141_s1] sm:$0xff]  ;;  %v12_v1 = vld [vmem:[%s141_s1 + $0x8] sm:$0xff]  ;;  %89 = vset.pattern.permute.xlu1 %v99_v2  ;;  %90 = vset.pattern.permute.xlu0 %v99_v2 }
   0x2   :  { %v38_v3 = vld [vmem:[%s142_s0] sm:$0xff]  ;;  %v14_v4 = vsel %vm13_vm0, %v11_v0, -inf  ;;  %v39_v5 = vld [vmem:[%s142_s0 + $0x8] sm:$0xff]  ;;  %v17_v6 = vsel %vm13_vm0, %v12_v1, -inf  ;;  %v37_v17 = vand.u32 127, %v36_v13 }
   0x3   :  { %41 = vperm.xlu1 %89, %v38_v3   ;;  %15 = vmax.xlane.f32.xlu0 %v14_v4 }
   0x7   :  { %44 = vperm.xlu1 %89, %v39_v5   ;;  %18 = vmax.xlane.f32.xlu0 %v17_v6 }
  0x7e   :  { %v42_v16 = vpop.permute.xlu1 %41 }
  0x7f   :  { %vm46_vm1 = vcmp.eq.s32.totalorder %v37_v17, %v42_v16 }
  0x82   :  { %v45_v21 = vpop.permute.xlu1 %44 }
  0x83   :  { %vm47_vm2 = vcmp.eq.s32.totalorder %v37_v17, %v45_v21 }
  0x8c   :  { %v16_v7 = vpop.xlane.xlu0 %15 }
  0x8d   :  { %v20_v8 = vsub.f32 %v11_v0, %v16_v7 }
  0x8f   :  { %v22_v9 = vmul.f32 1.442695, %v20_v8  ;;  %v48_v19 = vsel %vm13_vm0, %v20_v8, 0.0  ;;  %v54_v23 = vsel %vm46_vm1, %v20_v8, 0.0 }
  0x90   :  { %v19_v10 = vpop.xlane.xlu0 %18  ;;  %v56_v24 = vsel %vm13_vm0, %v54_v23, 0.0 }
  0x91   :  { %91 = vpow2.f32 %v22_v9  ;;  %v21_v11 = vsub.f32 %v12_v1, %v19_v10 }
  0x93   :  { %v24_v12 = vmul.f32 1.442695, %v21_v11  ;;  %v51_v22 = vsel %vm13_vm0, %v21_v11, 0.0  ;;  %v55_v25 = vsel %vm47_vm2, %v21_v11, 0.0 }
  0x94   :  { %v59_v26 = vsel %vm13_vm0, %v55_v25, 0.0 }
  0x95   :  { %93 = vpow2.f32 %v24_v12 }
  0x9e   :  { %v92_v14 = vpop.eup %91 }
  0x9f   :  { %v26_v15 = vsel %vm13_vm0, %v92_v14, 0.0 }
  0xa0   :  { %27 = vadd.xlane.f32.xlu0 %v26_v15 }
  0xa2   :  { %v94_v18 = vpop.eup %93 }
  0xa3   :  { %v29_v20 = vsel %vm13_vm0, %v94_v18, 0.0 }
  0xa4   :  { %49 = vadd.xlane.f32.xlu0 %v48_v19  ;;  %30 = vadd.xlane.f32.xlu1 %v29_v20 }
  0xa8   :  { %52 = vadd.xlane.f32.xlu0 %v51_v22 }
  0xac   :  { %57 = vadd.xlane.f32.xlu0 %v56_v24 }
  0xb0   :  { %60 = vadd.xlane.f32.xlu0 %v59_v26 }
 0x129   :  { %v28_v27 = vpop.xlane.xlu0 %27 }
 0x12a   :  { %95 = vlog2.f32 %v28_v27 }
 0x12d   :  { %v50_v28 = vpop.xlane.xlu0 %49  ;;  %v31_v29 = vpop.xlane.xlu1 %30 }
 0x12e   :  { %97 = vlog2.f32 %v31_v29  ;;  %v62_v32 = vmul.f32 0.0032258064, %v50_v28 }
 0x131   :  { %v53_v30 = vpop.xlane.xlu0 %52 }
 0x132   :  { %v63_v38 = vmul.f32 0.0032258064, %v53_v30 }
 0x135   :  { %v58_v31 = vpop.xlane.xlu0 %57 }
 0x136   :  { %v64_v33 = vmul.f32 0.8967742, %v58_v31 }
 0x137   :  { %v96_v34 = vpop.eup %95 }
 0x138   :  { %v33_v35 = vmul.f32 0.6931472, %v96_v34  ;;  %v66_v36 = vadd.f32 %v64_v33, %v62_v32 }
 0x139   :  { %v61_v37 = vpop.xlane.xlu0 %60 }
 0x13a   :  { %v68_v39 = vsub.f32 %v33_v35, %v66_v36  ;;  %v65_v40 = vmul.f32 0.8967742, %v61_v37 }
 0x13b   :  { %v98_v41 = vpop.eup %97 }
 0x13c   :  { %v35_v42 = vmul.f32 0.6931472, %v98_v41  ;;  %82 = vst.msk [vmem:[%s143_s2] sm:$0xff] %vm81_vm3, %v68_v39  ;;  %v67_v43 = vadd.f32 %v65_v40, %v63_v38 }
 0x13e   :  { %v69_v44 = vsub.f32 %v35_v42, %v67_v43 }
 0x140   :  { %83 = vst.msk [vmem:[%s143_s2 + $0x8] sm:$0xff] %vm81_vm3, %v69_v44 }

</bundles_post_ra>
